<compile_context>
chip_gen: v7x
topology: tpu7x:2x2x1
jax: 0.10.0
libtpu: 0.0.40
codegen_flags: <defaults>
</compile_context>

<pallas_src>
import functools

import numpy as np
import jax
import jax.numpy as jnp
from jax import lax
from jax.experimental import pallas as pl
from jax.experimental.pallas import tpu as pltpu

# ----------------------------- configuration --------------------------------
B = 2            # batch
S = 8            # seq_len
D = 32           # bert_encoder_dim (config.hidden_size)
HT = 16          # target_hidden_dim
HR = 16          # relation_hidden_dim
ATT = 16         # relation-attention hidden dim
LABEL = 6        # label_alphabet.size()
L2 = LABEL + 2   # label_size + 2 (CRF adds START/STOP)
VOCAB = 30
STEPS = 2        # args.step
THRESH = 0.1     # args.relation_threds

START_TAG = L2 - 2
STOP_TAG = L2 - 1


# ------------------------------ Pallas kernel --------------------------------
def _step_kernel(h_ref, r_ref, t_ref, w_in_ref, w_out_ref, b_ref, va_ref,
                 tag_ref, rscore_ref, *, thresh):
    """One SDRN interaction step for one batch element (fused projections)."""
    h = h_ref[0]                                             # (S, D)
    r = r_ref[0]                                             # (S, S)
    t = t_ref[0]                                             # (S, S)

    # ---- target channel: relation-weighted pooling of the BERT states ----
    r = jnp.where(r >= thresh, r, 0.0)                       # r * r.ge(thresh)
    tw = jnp.dot(r, h, preferred_element_type=jnp.float32)   # bmm(r, H)
    tdiv = jnp.sum(r, axis=1, keepdims=True)
    tdiv = tdiv + (tdiv == 0.0).astype(jnp.float32)          # avoid div-by-0
    target_r = tw * pl.reciprocal(tdiv, approx=True)

    # ---- relation channel: target-weighted pooling of the BERT states ----
    rw = jnp.dot(t, h, preferred_element_type=jnp.float32)
    rdiv = jnp.sum(t, axis=1, keepdims=True)
    rdiv = rdiv + (rdiv == 0.0).astype(jnp.float32)
    relation_a = rw * pl.reciprocal(rdiv, approx=True)

    # ---- fused hidden projections: one MXU call instead of four ----
    # [h | target_r | relation_a] (S, 3D) @ block-structured (3D, HT+HR)
    x_big = jnp.concatenate([h, target_r, relation_a], axis=1)
    hidden = jnp.tanh(jnp.dot(x_big, w_in_ref[...],
                              preferred_element_type=jnp.float32))  # (S, HT+HR)

    # ---- fused output projections: hidden2tag + attention W1/W2 ----
    out2 = jnp.dot(hidden, w_out_ref[...],
                   preferred_element_type=jnp.float32)       # (S, L2 + 2*ATT)

    # target hidden -> tag scores (CRF emission features)
    tag_ref[0] = out2[:, :L2] + b_ref[...]                   # (S, L2) + (1, L2)

    # ---- relation attention: sigmoid(v . tanh(W1 h_i + W2 h_j)) ----
    # TODO(synk): RelationAttention source is external; this is a deterministic
    #             additive-attention stand-in with the documented output shape.
    u1 = out2[:, L2:L2 + ATT]                                # (S, ATT)
    u2 = out2[:, L2 + ATT:]                                  # (S, ATT)
    e = jnp.tanh(u1[:, None, :] + u2[None, :, :])            # (S, S, ATT)
    score = jnp.sum(e * va_ref[...][None], axis=-1)          # (S, S)
    rscore_ref[0] = jax.nn.sigmoid(score)


def _full_spec(shape):
    nd = len(shape)
    return pl.BlockSpec(shape, lambda b, _nd=nd: (0,) * _nd)


def interaction_step(h, r_tensor, t_tensor, w_in, w_out, b_tag, va):
    kernel = functools.partial(_step_kernel, thresh=THRESH)
    return pl.pallas_call(
        kernel,
        out_shape=(jax.ShapeDtypeStruct((B, S, L2), jnp.float32),
                   jax.ShapeDtypeStruct((B, S, S), jnp.float32)),
        grid=(B,),
        in_specs=[
            pl.BlockSpec((1, S, D), lambda b: (b, 0, 0)),   # sequence_output
            pl.BlockSpec((1, S, S), lambda b: (b, 0, 0)),   # r_tensor
            pl.BlockSpec((1, S, S), lambda b: (b, 0, 0)),   # t_tensor
            _full_spec((3 * D, HT + HR)),                   # fused input proj
            _full_spec((HT + HR, L2 + 2 * ATT)),            # fused output proj
            _full_spec((1, L2)),                            # hidden2tag bias
            _full_spec((1, ATT)),                           # attention v
        ],
        out_specs=[
            pl.BlockSpec((1, S, L2), lambda b: (b, 0, 0)),
            pl.BlockSpec((1, S, S), lambda b: (b, 0, 0)),
        ],
        compiler_params=pltpu.CompilerParams(
            dimension_semantics=("parallel",)),             # v7x: 2 TCs
    )(h, r_tensor, t_tensor, w_in, w_out, b_tag, va)


# --------------------- device-side CRF viterbi (lax.scan) --------------------
def viterbi_decode(feats, mask, transitions):
    """Masked viterbi decode on device.

    feats: (B, S, L2), mask: (B, S) float {0,1}, transitions[i, j] = score(i->j).
    Returns path_score (B, 1) f32 and best_path (B, S) int32.
    """
    # TODO(synk): exact NCRF++ CRF internals are external; this is a plain viterbi.
    nB, nS, nT = feats.shape
    start = transitions[START_TAG, :]
    stop = transitions[:, STOP_TAG]
    idx_id = jnp.arange(nT, dtype=jnp.int32)

    dp0 = feats[:, 0, :] + start[None, :]                    # (B, L2)

    def fwd_step(dp, xs):
        feat_t, m_t = xs                                     # (B, L2), (B,)
        cand = dp[:, :, None] + transitions[None, :, :] + feat_t[:, None, :]
        best_prev = jnp.argmax(cand, axis=1).astype(jnp.int32)   # (B, L2)
        new_dp = jnp.max(cand, axis=1)                           # (B, L2)
        m = (m_t > 0)[:, None]
        dp = jnp.where(m, new_dp, dp)
        bp = jnp.where(m, best_prev, idx_id[None, :])        # identity when masked
        return dp, bp

    xs = (jnp.swapaxes(feats[:, 1:, :], 0, 1),               # (S-1, B, L2)
          jnp.swapaxes(mask[:, 1:], 0, 1))                   # (S-1, B)
    dp_final, bps = lax.scan(fwd_step, dp0, xs)

    final = dp_final + stop[None, :]
    last_tag = jnp.argmax(final, axis=1).astype(jnp.int32)   # (B,)
    path_score = jnp.max(final, axis=1, keepdims=True).astype(jnp.float32)

    def back_step(tag, bp_t):
        prev = jnp.take_along_axis(bp_t, tag[:, None], axis=1)[:, 0]
        return prev, prev

    _, prev_tags = lax.scan(back_step, last_tag, bps, reverse=True)  # (S-1, B)
    path = jnp.concatenate([jnp.swapaxes(prev_tags, 0, 1),
                            last_tag[:, None]], axis=1)      # (B, S)
    path = jnp.where(mask > 0, path, 0).astype(jnp.int32)
    return path_score, path


# ------------------- device-side makeEntity (lax.scan, vmap) ------------------
def make_entity(tag_seq):
    """Exact transcription of opinionMining.makeEntity for one sequence."""
    idxs = jnp.arange(S)

    def mark(acc, begin, end):
        row = (idxs >= begin) & (idxs < end)
        block = row[:, None] & row[None, :]
        return jnp.where((begin >= 0) & block, 1.0, acc)

    def body(carry, xs):
        acc, ab, ae, ob, oe = carry
        idy, tag = xs
        close = (tag == 0) | (tag == 1) | (tag == 2) | (tag == 4)
        acc = jnp.where(close, mark(mark(acc, ab, ae), ob, oe), acc)
        ab = jnp.where(close, -1, ab)
        ae = jnp.where(close, -1, ae)
        ob = jnp.where(close, -1, ob)
        oe = jnp.where(close, -1, oe)
        ab = jnp.where(tag == 2, idy, ab)
        ae = jnp.where(tag == 2, idy + 1, ae)
        ae = jnp.where((tag == 3) & (ab != -1), ae + 1, ae)
        ob = jnp.where(tag == 4, idy, ob)
        oe = jnp.where(tag == 4, idy + 1, oe)
        oe = jnp.where((tag == 5) & (ob != -1), oe + 1, oe)
        return (acc, ab, ae, ob, oe), None

    init = (jnp.zeros((S, S), jnp.float32),
            jnp.array(-1, jnp.int32), jnp.array(-1, jnp.int32),
            jnp.array(-1, jnp.int32), jnp.array(-1, jnp.int32))
    xs = (jnp.arange(S, dtype=jnp.int32), tag_seq.astype(jnp.int32))
    (acc, ab, ae, ob, oe), _ = lax.scan(body, init, xs)
    acc = mark(mark(acc, ab, ae), ob, oe)
    return acc


# ------------------------------ parameters ------------------------------------
def xavier_uniform(key, shape):
    fan_out, fan_in = shape
    a = float(np.sqrt(6.0 / (fan_in + fan_out)))
    return jax.random.uniform(key, shape, jnp.float32, minval=-a, maxval=a)


def init_params(key):
    ks = jax.random.split(key, 16)
    return {
        # synthetic BERT embedding stub
        "word_emb": 0.1 * jax.random.normal(ks[0], (VOCAB, D), jnp.float32),
        "seg_emb": 0.1 * jax.random.normal(ks[1], (2, D), jnp.float32),
        "pos_emb": 0.1 * jax.random.normal(ks[2], (S, D), jnp.float32),
        # opinionMining parameters (shapes from __init__)
        "targetSyn_r": xavier_uniform(ks[3], (HT, D)),
        "targetSyn_s": xavier_uniform(ks[4], (HT, D)),
        "relationSyn_u": xavier_uniform(ks[5], (HR, D)),
        "relationSyn_s": xavier_uniform(ks[6], (HR, D)),
        "targetHidden2Tag": xavier_uniform(ks[7], (L2, HT)),
        "targetHidden2Tag_b": xavier_uniform(ks[8], (1, L2)),
        # relation-attention stand-in
        "attn_W1": xavier_uniform(ks[9], (ATT, HR)),
        "attn_W2": xavier_uniform(ks[10], (ATT, HR)),
        "attn_v": xavier_uniform(ks[11], (1, ATT)),
        # CRF transition stand-in
        "transitions": 0.1 * jax.random.normal(ks[12], (L2, L2), jnp.float32),
    }


def fuse_weights(params):
    """Pre-transpose and pack the projection weights (done once, host side)."""
    w_in = jnp.zeros((3 * D, HT + HR), jnp.float32)
    w_in = w_in.at[0:D, 0:HT].set(params["targetSyn_s"].T)
    w_in = w_in.at[D:2 * D, 0:HT].set(params["targetSyn_r"].T)
    w_in = w_in.at[0:D, HT:].set(params["relationSyn_s"].T)
    w_in = w_in.at[2 * D:3 * D, HT:].set(params["relationSyn_u"].T)

    w_out = jnp.zeros((HT + HR, L2 + 2 * ATT), jnp.float32)
    w_out = w_out.at[0:HT, 0:L2].set(params["targetHidden2Tag"].T)
    w_out = w_out.at[HT:, L2:L2 + ATT].set(params["attn_W1"].T)
    w_out = w_out.at[HT:, L2 + ATT:].set(params["attn_W2"].T)
    return w_in, w_out


# ------------------------------ forward ---------------------------------------
def opinion_mining_forward(params, w_in, w_out, input_ids, segment_ids, input_mask):
    # TODO(synk): the full BertModel encoder is external; replaced by a
    #             deterministic embedding stub (dropout is identity in eval).
    h = jnp.tanh(params["word_emb"][input_ids]
                 + params["seg_emb"][segment_ids]
                 + params["pos_emb"][None, :, :]).astype(jnp.float32)

    maskf = input_mask.astype(jnp.float32)
    mask_matrix = maskf[:, None, :] * maskf[:, :, None]      # (B, S, S)

    t_tensor = jnp.zeros((B, S, S), jnp.float32)
    r_tensor = jnp.zeros((B, S, S), jnp.float32)
    trans = params["transitions"]

    tag_input = None
    for _ in range(STEPS):
        tag_input, rel_score = interaction_step(
            h, r_tensor, t_tensor, w_in, w_out,
            params["targetHidden2Tag_b"], params["attn_v"])

        path_score, tag_seq = viterbi_decode(tag_input, maskf, trans)
        temp_t = jax.vmap(make_entity)(tag_seq)              # (B, S, S)
        # tag_score.unsqueeze(2).repeat + tag_score.unsqueeze(1).repeat == 2*score
        tag_score_final = path_score[:, :, None] + path_score[:, None, :]
        t_tensor = tag_score_final * temp_t
        r_tensor = rel_score * mask_matrix

    # forward(): one more viterbi on the returned targetPredictScore
    _, tag_seq = viterbi_decode(tag_input, maskf, trans)
    return tag_seq, r_tensor


forward_jit = jax.jit(opinion_mining_forward)


# ------------------------------ main -------------------------------------------
if __name__ == "__main__":
    key = jax.random.PRNGKey(0)
    k_param, k_ids = jax.random.split(key)
    params = init_params(k_param)
    w_in, w_out = fuse_weights(params)

    input_ids = jax.random.randint(k_ids, (B, S), 0, VOCAB, dtype=jnp.int32)
    segment_ids = jnp.zeros((B, S), jnp.int32)
    input_mask = jnp.asarray(
        [[1] * S, [1] * (S - 2) + [0, 0]], dtype=jnp.int32)   # second sample padded

    tag_seq, r_tensor = forward_jit(
        params, w_in, w_out, input_ids, segment_ids, input_mask)
    jax.block_until_ready(r_tensor)
    jax.block_until_ready(tag_seq)

    assert tag_seq.shape == (B, S)
    assert r_tensor.shape == (B, S, S)
    print("KERNEL_OK")
</pallas_src>

<mosaic_0001>
module attributes {stable_mosaic.version = 11 : i64} {
  func.func @_step_kernel(%arg0: i32, %arg1: memref<1x8x32xf32, #tpu.memory_space<vmem>>, %arg2: memref<1x8x8xf32, #tpu.memory_space<vmem>>, %arg3: memref<1x8x8xf32, #tpu.memory_space<vmem>>, %arg4: memref<96x32xf32, #tpu.memory_space<vmem>>, %arg5: memref<32x40xf32, #tpu.memory_space<vmem>>, %arg6: memref<1x8xf32, #tpu.memory_space<vmem>>, %arg7: memref<1x16xf32, #tpu.memory_space<vmem>>, %arg8: memref<1x8x8xf32, #tpu.memory_space<vmem>>, %arg9: memref<1x8x8xf32, #tpu.memory_space<vmem>>) attributes {dimension_semantics = [#tpu.dimension_semantics<parallel>], iteration_bounds = array<i64: 2>, scalar_prefetch = 0 : i64, scratch_operands = 0 : i64, tpu.core_type = #tpu.core_type<tc>, window_params = [{transform_indices = @transform_0, window_bounds = array<i64: 1, 8, 32>}, {transform_indices = @transform_1, window_bounds = array<i64: 1, 8, 8>}, {transform_indices = @transform_2, window_bounds = array<i64: 1, 8, 8>}, {pipeline_mode = #tpu.pipeline_mode<synchronous>, transform_indices = @transform_3, window_bounds = array<i64: 96, 32>}, {pipeline_mode = #tpu.pipeline_mode<synchronous>, transform_indices = @transform_4, window_bounds = array<i64: 32, 40>}, {pipeline_mode = #tpu.pipeline_mode<synchronous>, transform_indices = @transform_5, window_bounds = array<i64: 1, 8>}, {pipeline_mode = #tpu.pipeline_mode<synchronous>, transform_indices = @transform_6, window_bounds = array<i64: 1, 16>}, {transform_indices = @transform_7, window_bounds = array<i64: 1, 8, 8>}, {transform_indices = @transform_8, window_bounds = array<i64: 1, 8, 8>}]} {
    %c0 = arith.constant 0 : index
    %c0_0 = arith.constant 0 : index
    %c0_1 = arith.constant 0 : index
    %0 = vector.load %arg1[%c0, %c0_0, %c0_1] : memref<1x8x32xf32, #tpu.memory_space<vmem>>, vector<1x8x32xf32>
    %1 = vector.shape_cast %0 : vector<1x8x32xf32> to vector<8x32xf32>
    %c0_2 = arith.constant 0 : index
    %c0_3 = arith.constant 0 : index
    %c0_4 = arith.constant 0 : index
    %2 = vector.load %arg2[%c0_2, %c0_3, %c0_4] : memref<1x8x8xf32, #tpu.memory_space<vmem>>, vector<1x8x8xf32>
    %3 = vector.shape_cast %2 : vector<1x8x8xf32> to vector<8x8xf32>
    %c0_5 = arith.constant 0 : index
    %c0_6 = arith.constant 0 : index
    %c0_7 = arith.constant 0 : index
    %4 = vector.load %arg3[%c0_5, %c0_6, %c0_7] : memref<1x8x8xf32, #tpu.memory_space<vmem>>, vector<1x8x8xf32>
    %5 = vector.shape_cast %4 : vector<1x8x8xf32> to vector<8x8xf32>
    %cst = arith.constant 1.000000e-01 : f32
    %6 = vector.broadcast %cst : f32 to vector<8x8xf32>
    %7 = arith.cmpf oge, %3, %6 : vector<8x8xf32>
    %cst_8 = arith.constant 0.000000e+00 : f32
    %8 = vector.broadcast %cst_8 : f32 to vector<8x8xf32>
    %9 = arith.select %7, %3, %8 : vector<8x8xi1>, vector<8x8xf32>
    %cst_9 = arith.constant dense<0.000000e+00> : vector<8x32xf32>
    %10 = tpu.matmul %9, %1, %cst_9 {dimension_numbers = #tpu.dot_dimension_numbers<[1], [0], [0], [1], [0, 0, 1, 1], [], []>} : vector<8x8xf32>, vector<8x32xf32>, vector<8x32xf32> -> vector<8x32xf32>
    %cst_10 = arith.constant dense<0.000000e+00> : vector<8xf32>
    %11 = vector.multi_reduction <add>, %9, %cst_10 [1] : vector<8x8xf32> to vector<8xf32>
    %12 = vector.shape_cast %11 : vector<8xf32> to vector<8x1xf32>
    %cst_11 = arith.constant 0.000000e+00 : f32
    %13 = vector.broadcast %cst_11 : f32 to vector<8x1xf32>
    %14 = arith.cmpf oeq, %12, %13 : vector<8x1xf32>
    %15 = arith.extui %14 : vector<8x1xi1> to vector<8x1xi32>
    %16 = arith.sitofp %15 : vector<8x1xi32> to vector<8x1xf32>
    %17 = arith.addf %12, %16 : vector<8x1xf32>
    %18 = tpu.reciprocal %17 {approx = true} : vector<8x1xf32> -> vector<8x1xf32>
    %19 = vector.broadcast %18 : vector<8x1xf32> to vector<8x32xf32>
    %20 = arith.mulf %10, %19 : vector<8x32xf32>
    %cst_12 = arith.constant dense<0.000000e+00> : vector<8x32xf32>
    %21 = tpu.matmul %5, %1, %cst_12 {dimension_numbers = #tpu.dot_dimension_numbers<[1], [0], [0], [1], [0, 0, 1, 1], [], []>} : vector<8x8xf32>, vector<8x32xf32>, vector<8x32xf32> -> vector<8x32xf32>
    %cst_13 = arith.constant dense<0.000000e+00> : vector<8xf32>
    %22 = vector.multi_reduction <add>, %5, %cst_13 [1] : vector<8x8xf32> to vector<8xf32>
    %23 = vector.shape_cast %22 : vector<8xf32> to vector<8x1xf32>
    %cst_14 = arith.constant 0.000000e+00 : f32
    %24 = vector.broadcast %cst_14 : f32 to vector<8x1xf32>
    %25 = arith.cmpf oeq, %23, %24 : vector<8x1xf32>
    %26 = arith.extui %25 : vector<8x1xi1> to vector<8x1xi32>
    %27 = arith.sitofp %26 : vector<8x1xi32> to vector<8x1xf32>
    %28 = arith.addf %23, %27 : vector<8x1xf32>
    %29 = tpu.reciprocal %28 {approx = true} : vector<8x1xf32> -> vector<8x1xf32>
    %30 = vector.broadcast %29 : vector<8x1xf32> to vector<8x32xf32>
    %31 = arith.mulf %21, %30 : vector<8x32xf32>
    %32 = tpu.concatenate %1, %20, %31 in 1 : vector<8x32xf32>, vector<8x32xf32>, vector<8x32xf32> -> vector<8x96xf32>
    %c0_15 = arith.constant 0 : index
    %c0_16 = arith.constant 0 : index
    %33 = vector.load %arg4[%c0_15, %c0_16] : memref<96x32xf32, #tpu.memory_space<vmem>>, vector<96x32xf32>
    %cst_17 = arith.constant dense<0.000000e+00> : vector<8x32xf32>
    %34 = tpu.matmul %32, %33, %cst_17 {dimension_numbers = #tpu.dot_dimension_numbers<[1], [0], [0], [1], [0, 0, 1, 1], [], []>} : vector<8x96xf32>, vector<96x32xf32>, vector<8x32xf32> -> vector<8x32xf32>
    %35 = math.tanh %34 : vector<8x32xf32>
    %c0_18 = arith.constant 0 : index
    %c0_19 = arith.constant 0 : index
    %36 = vector.load %arg5[%c0_18, %c0_19] : memref<32x40xf32, #tpu.memory_space<vmem>>, vector<32x40xf32>
    %cst_20 = arith.constant dense<0.000000e+00> : vector<8x40xf32>
    %37 = tpu.matmul %35, %36, %cst_20 {dimension_numbers = #tpu.dot_dimension_numbers<[1], [0], [0], [1], [0, 0, 1, 1], [], []>} : vector<8x32xf32>, vector<32x40xf32>, vector<8x40xf32> -> vector<8x40xf32>
    %38 = vector.extract_strided_slice %37 {offsets = [0, 0], sizes = [8, 8], strides = [1, 1]} : vector<8x40xf32> to vector<8x8xf32>
    %c0_21 = arith.constant 0 : index
    %c0_22 = arith.constant 0 : index
    %39 = vector.load %arg6[%c0_21, %c0_22] : memref<1x8xf32, #tpu.memory_space<vmem>>, vector<1x8xf32>
    %40 = vector.broadcast %39 : vector<1x8xf32> to vector<8x8xf32>
    %41 = arith.addf %38, %40 : vector<8x8xf32>
    %c0_23 = arith.constant 0 : index
    %c0_24 = arith.constant 0 : index
    %c0_25 = arith.constant 0 : index
    %42 = vector.load %arg8[%c0_23, %c0_24, %c0_25] : memref<1x8x8xf32, #tpu.memory_space<vmem>>, vector<1x8x8xf32>
    %43 = vector.shape_cast %42 : vector<1x8x8xf32> to vector<8x8xf32>
    %44 = vector.shape_cast %41 : vector<8x8xf32> to vector<1x8x8xf32>
    tpu.vector_store %arg8[%c0_23, %c0_24, %c0_25], %44 {strides = array<i32>} : memref<1x8x8xf32, #tpu.memory_space<vmem>>, vector<1x8x8xf32>,
    %45 = vector.extract_strided_slice %37 {offsets = [0, 8], sizes = [8, 16], strides = [1, 1]} : vector<8x40xf32> to vector<8x16xf32>
    %46 = vector.extract_strided_slice %37 {offsets = [0, 24], sizes = [8, 16], strides = [1, 1]} : vector<8x40xf32> to vector<8x16xf32>
    %47 = vector.shape_cast %45 : vector<8x16xf32> to vector<8x1x16xf32>
    %48 = vector.shape_cast %46 : vector<8x16xf32> to vector<1x8x16xf32>
    %49 = vector.broadcast %47 : vector<8x1x16xf32> to vector<8x8x16xf32>
    %50 = vector.broadcast %48 : vector<1x8x16xf32> to vector<8x8x16xf32>
    %51 = arith.addf %49, %50 : vector<8x8x16xf32>
    %52 = math.tanh %51 : vector<8x8x16xf32>
    %c0_26 = arith.constant 0 : index
    %c0_27 = arith.constant 0 : index
    %53 = vector.load %arg7[%c0_26, %c0_27] : memref<1x16xf32, #tpu.memory_space<vmem>>, vector<1x16xf32>
    %54 = vector.shape_cast %53 : vector<1x16xf32> to vector<1x1x16xf32>
    %55 = vector.broadcast %54 : vector<1x1x16xf32> to vector<8x8x16xf32>
    %56 = arith.mulf %52, %55 : vector<8x8x16xf32>
    %cst_28 = arith.constant dense<0.000000e+00> : vector<8x8xf32>
    %57 = vector.multi_reduction <add>, %56, %cst_28 [2] : vector<8x8x16xf32> to vector<8x8xf32>
    %58 = arith.negf %57 : vector<8x8xf32>
    %59 = math.exp %58 : vector<8x8xf32>
    %cst_29 = arith.constant 1.000000e+00 : f32
    %60 = vector.broadcast %cst_29 : f32 to vector<8x8xf32>
    %61 = arith.addf %60, %59 : vector<8x8xf32>
    %62 = arith.divf %60, %61 : vector<8x8xf32>
    %c0_30 = arith.constant 0 : index
    %c0_31 = arith.constant 0 : index
    %c0_32 = arith.constant 0 : index
    %63 = vector.load %arg9[%c0_30, %c0_31, %c0_32] : memref<1x8x8xf32, #tpu.memory_space<vmem>>, vector<1x8x8xf32>
    %64 = vector.shape_cast %63 : vector<1x8x8xf32> to vector<8x8xf32>
    %65 = vector.shape_cast %62 : vector<8x8xf32> to vector<1x8x8xf32>
    tpu.vector_store %arg9[%c0_30, %c0_31, %c0_32], %65 {strides = array<i32>} : memref<1x8x8xf32, #tpu.memory_space<vmem>>, vector<1x8x8xf32>,
    return
  }
  func.func @transform_0(%arg0: i32) -> (i32, i32, i32) {
    %c0_i32 = arith.constant 0 : i32
    %c0_i32_0 = arith.constant 0 : i32
    %c0_i32_1 = arith.constant 0 : i32
    return %arg0, %c0_i32, %c0_i32_0 : i32, i32, i32
  }
  func.func @transform_1(%arg0: i32) -> (i32, i32, i32) {
    %c0_i32 = arith.constant 0 : i32
    %c0_i32_0 = arith.constant 0 : i32
    %c0_i32_1 = arith.constant 0 : i32
    return %arg0, %c0_i32, %c0_i32_0 : i32, i32, i32
  }
  func.func @transform_2(%arg0: i32) -> (i32, i32, i32) {
    %c0_i32 = arith.constant 0 : i32
    %c0_i32_0 = arith.constant 0 : i32
    %c0_i32_1 = arith.constant 0 : i32
    return %arg0, %c0_i32, %c0_i32_0 : i32, i32, i32
  }
  func.func @transform_3(%arg0: i32) -> (i32, i32) {
    %c0_i32 = arith.constant 0 : i32
    %c0_i32_0 = arith.constant 0 : i32
    %c0_i32_1 = arith.constant 0 : i32
    return %c0_i32, %c0_i32_0 : i32, i32
  }
  func.func @transform_4(%arg0: i32) -> (i32, i32) {
    %c0_i32 = arith.constant 0 : i32
    %c0_i32_0 = arith.constant 0 : i32
    %c0_i32_1 = arith.constant 0 : i32
    return %c0_i32, %c0_i32_0 : i32, i32
  }
  func.func @transform_5(%arg0: i32) -> (i32, i32) {
    %c0_i32 = arith.constant 0 : i32
    %c0_i32_0 = arith.constant 0 : i32
    %c0_i32_1 = arith.constant 0 : i32
    return %c0_i32, %c0_i32_0 : i32, i32
  }
  func.func @transform_6(%arg0: i32) -> (i32, i32) {
    %c0_i32 = arith.constant 0 : i32
    %c0_i32_0 = arith.constant 0 : i32
    %c0_i32_1 = arith.constant 0 : i32
    return %c0_i32, %c0_i32_0 : i32, i32
  }
  func.func @transform_7(%arg0: i32) -> (i32, i32, i32) {
    %c0_i32 = arith.constant 0 : i32
    %c0_i32_0 = arith.constant 0 : i32
    %c0_i32_1 = arith.constant 0 : i32
    return %arg0, %c0_i32, %c0_i32_0 : i32, i32, i32
  }
  func.func @transform_8(%arg0: i32) -> (i32, i32, i32) {
    %c0_i32 = arith.constant 0 : i32
    %c0_i32_0 = arith.constant 0 : i32
    %c0_i32_1 = arith.constant 0 : i32
    return %arg0, %c0_i32, %c0_i32_0 : i32, i32, i32
  }
}

</mosaic_0001>

<bundles_post_ra>
// kernel: custom-call.4
= control target key start
LH: loop header
LB: loop body
LE: loop exit
PB: predicated region body
PF: predicated region fallthrough
CT: control target
= control target key end

     0   :  { %s6_s0 = inlined_call_operand.vmem [shape: f32[2,8,8], index: 0, kind: output, shape index: {}]  }

// kernel: custom-call.5
= control target key start
LH: loop header
LB: loop body
LE: loop exit
PB: predicated region body
PF: predicated region fallthrough
CT: control target
= control target key end

     0   :  { %s6_s0 = inlined_call_operand.vmem [shape: s32[2], index: 0, kind: output, shape index: {}]  }

// kernel: opinion_mining_forward.2
= control target key start
LH: loop header
LB: loop body
LE: loop exit
PB: predicated region body
PF: predicated region fallthrough
CT: control target
= control target key end

     0   :  { %s1353_s27 = smov 0   ;;  %s1483_s0 = inlined_call_operand.vmem [shape: f32[2,8,32], index: 0, kind: input, shape index: {}]   ;;  %s1484_s1 = inlined_call_operand.vmem [shape: f32[2,8,8], index: 1, kind: input, shape index: {}, may-alias: {1,2}]   ;;  %s1485_s2 = inlined_call_operand.vmem [shape: f32[2,8,8], index: 2, kind: input, shape index: {}, may-alias: {1,2}]   ;;  %s1486_s3 = inlined_call_operand.vmem [shape: f32[96,32], index: 3, kind: input, shape index: {}]   ;;  %s1487_s4 = inlined_call_operand.vmem [shape: f32[32,40], index: 4, kind: input, shape index: {}]   ;;  %s1488_s5 = inlined_call_operand.vmem [shape: f32[1,8], index: 5, kind: input, shape index: {}]   ;;  %s1489_s6 = inlined_call_operand.vmem [shape: f32[1,16], index: 6, kind: input, shape index: {}]   ;;  %s1490_s7 = inlined_call_operand.vmem [shape: f32[2,8,8], index: 7, kind: output, shape index: {0}]   ;;  %s1491_s8 = inlined_call_operand.vmem [shape: f32[2,8,8], index: 8, kind: output, shape index: {1}]  }
   0x1 LB: > { %s1098_s28 = sadd.s32 4294967295, %s1297_s27   ;;  %p1102_p0 = scmp.ge.s32.totalorder %s1297_s27, 1  ;;  %s1297_s27 = sphi %s1353_s27, %s19_s27  }
   0x2   : > { %p282_p1 = scmp.lt.s32.totalorder %s1297_s27, 3 }
   0x4   : > { %p283_p2 = pnand %p1102_p0, %p282_p1 }
   0x5   : > { %p326_p3 = scmp.lt.s32.totalorder (!%p283_p2), %s1098_s28, 1  ;;  %v1299_v0 = vmov (!%p283_p2), 0.0   ;;  %vm1300_vm0 = vmmov (!%p283_p2), 0   ;;  %vm351_vm1 = vcmask (!%p283_p2), 64512   ;;  %v528_v7 = vld [vmem:[%s1486_s3] sm:$0xff] (!%p283_p2)  ;;  %v529_v8 = vld [vmem:[%s1486_s3 + $0x8] sm:$0xff] (!%p283_p2)  ;;  %v706_v53 = vlaneseq (!%p283_p2) }
   0x6   : > { %286 = sbr.rel (%p283_p2) target bundleno = 1229 (0x4cd), region = 48  ;;  %1148 = vmatprep.subr.mxu1 (!%p283_p2), %v1299_v0  ;;  %1150 = vmatprep.mubr.msk.f32.mxu1 (!%p283_p2), %vm1300_vm0, %v1299_v0  ;;  %v530_v9 = vld [vmem:[%s1486_s3 + $0x10] sm:$0xff] (!%p283_p2)  ;;  %v1301_v10 = vmov (!%p283_p2), 0.0|0.0   ;;  %v1197_v11 = vpack.c.bf16 (!%p283_p2), %v529_v8, %v528_v7  ;;  %v531_v12 = vld [vmem:[%s1486_s3 + $0x18] sm:$0xff] (!%p283_p2)  ;;  %v532_v14 = vld [vmem:[%s1486_s3 + $0x20] sm:$0xff] (!%p283_p2)  ;;  %s1302_s21 = smov (!%p283_p2), 32  }
   0x7   : > { %1182 = vmatprep.mubr.msk.f32.mxu0 (!%p283_p2), %vm1300_vm0, %v1299_v0  ;;  %1196 = vmatprep.subr.bf16.mxu0 (!%p283_p2), %v1301_v10  ;;  %v1200_v13 = vpack.c.bf16 (!%p283_p2), %v531_v12, %v530_v9  ;;  %v533_v15 = vld [vmem:[%s1486_s3 + $0x28] sm:$0xff] (!%p283_p2)  ;;  %v534_v17 = vld [vmem:[%s1486_s3 + $0x30] sm:$0xff] (!%p283_p2)  ;;  %v535_v18 = vld [vmem:[%s1486_s3 + $0x38] sm:$0xff] (!%p283_p2)  ;;  %s1303_s22 = smov (!%p283_p2), 64   ;;  %vm524_vm5 = vcmask (!%p283_p2), 261120   ;;  %vm526_vm6 = vcmask (!%p283_p2), 523264  }
   0x8   : > { %1198 = vmatpush3.bf16.msra.mxu0 (!%p283_p2), %v1197_v11  ;;  %v1203_v16 = vpack.c.bf16 (!%p283_p2), %v533_v15, %v532_v14  ;;  %v1206_v19 = vpack.c.bf16 (!%p283_p2), %v535_v18, %v534_v17  ;;  %v536_v20 = vld [vmem:[%s1486_s3 + $0x40] sm:$0xff] (!%p283_p2)  ;;  %v537_v21 = vld [vmem:[%s1486_s3 + $0x48] sm:$0xff] (!%p283_p2)  ;;  %v538_v28 = vld [vmem:[%s1486_s3 + $0x50] sm:$0xff] (!%p283_p2)  ;;  %vm540_vm7 = vcmask (!%p283_p2), 785408   ;;  %v707_v54 = vshrl.u32 (!%p283_p2), %v706_v53, 7  ;;  %s1305_s19 = smov (!%p283_p2), 112  }
   0x9   : > { %1199 = vmatprep.subr.bf16.mxu0 (!%p283_p2), %v1301_v10  ;;  %v1209_v22 = vpack.c.bf16 (!%p283_p2), %v537_v21, %v536_v20  ;;  %v539_v29 = vld [vmem:[%s1486_s3 + $0x58] sm:$0xff] (!%p283_p2)  ;;  %v615_v44 = vld [vmem:[%s1487_s4] sm:$0xff] (!%p283_p2)  ;;  %v616_v45 = vld [vmem:[%s1487_s4 + $0x8] sm:$0xff] (!%p283_p2)  ;;  %v941_v55 = vand.u32 (!%p283_p2), 127, %v706_v53  ;;  %v1306_v62 = vmov (!%p283_p2), 1966171168  }
   0xa   : > { %v1212_v31 = vpack.c.bf16 (!%p283_p2), %v539_v29, %v538_v28  ;;  %v617_v46 = vld [vmem:[%s1487_s4 + $0x10] sm:$0xff] (!%p283_p2)  ;;  %v1215_v47 = vpack.c.bf16 (!%p283_p2), %v616_v45, %v615_v44  ;;  %v618_v48 = vld [vmem:[%s1487_s4 + $0x18] sm:$0xff] (!%p283_p2)  ;;  %v1115_v56 = vld [vmem:[%s1489_s6] ss:$0 sm:$0xff] (!%p283_p2)  ;;  %v704_v63 = vunpack.c.l.s4 (!%p283_p2), %v1306_v62  ;;  %s1307_s20 = smov (!%p283_p2), 120   ;;  %vm859_vm8 = vcmask (!%p283_p2), 130048  }
   0xb   : > { %v1218_v49 = vpack.c.bf16 (!%p283_p2), %v618_v48, %v617_v46  ;;  %v1449_v57 = vsub.s32 (!%p283_p2), %v941_v55, %v707_v54  ;;  %v1114_v58 = vld [vmem:[%s1488_s5] ss:$0 sm:$0xff] (!%p283_p2)  ;;  %vm974_vm9 = vcmask (!%p283_p2), 1041409   ;;  %vm976_vm10 = vcmask (!%p283_p2), 1042434  }
   0xc   : > { %1201 = vmatpush3.bf16.msra.mxu0 (!%p283_p2), %v1200_v13  ;;  %vm978_vm11 = vcmask (!%p283_p2), 1043459   ;;  %vm980_vm12 = vcmask (!%p283_p2), 1044484   ;;  %vm982_vm13 = vcmask (!%p283_p2), 1045509   ;;  %vm984_vm14 = vcmask (!%p283_p2), 1046534  }
   0xd   : > { %s1493_s28 = smov (!%p326_p3, %s1098_s28), 1  ;;  %1202 = vmatprep.subr.bf16.mxu0 %v1301_v10  ;;  %vm986_vm15 = vcmask 1047559  }
   0xe   : > { %s1363_s29 = sshll.u32 %s1493_s28, 3 }
   0xf   : > { %s329_s10 = scalar_lea.vmem %s1483_s0, %s1363_s29  ;;  %s333_s13 = scalar_lea.vmem %s1484_s1, %s1363_s29 }
  0x10   : > { %v1369_v1 = vld [vmem:[%s329_s10] sm:$0xff]  ;;  %s337_s16 = scalar_lea.vmem %s1485_s2, %s1363_s29  ;;  %1204 = vmatpush3.bf16.msra.mxu0 %v1203_v16  ;;  %s341_s18 = scalar_lea.vmem %s1490_s7, %s1363_s29 }
  0x11   : > { %1149 = vmatpush3.msra.mxu1 %v1369_v1  ;;  %v347_v2 = vld [vmem:[%s333_s13] sm:$0xff]  ;;  %1205 = vmatprep.subr.bf16.mxu0 %v1301_v10  ;;  %s1304_s13 = smov 8   ;;  %s345_s23 = scalar_lea.vmem %s1491_s8, %s1363_s29 }
  0x12   : > { %1153 = vmatprep.subr.mxu1 %v1299_v0  ;;  %vm349_vm2 = vcmp.ge.f32.partialorder %v347_v2, 0.1  ;;  %v348_v5 = vld [vmem:[%s337_s16] sm:$0xff] }
  0x13   : > { %v350_v3 = vsel %vm349_vm2, %v347_v2, 0.0  ;;  %v507_v6 = vsel %vm351_vm1, %v348_v5, 0.0 }
  0x14   : > { %1151 = vmatmul.mubr.msk.f32.vlgmr.msra.gmra.mrb[0].mxu1 %vm351_vm1, %v350_v3  ;;  %v425_v4 = vsel %vm351_vm1, %v350_v3, 0.0  ;;  %1207 = vmatpush3.bf16.msra.mxu0 %v1206_v19 }
  0x15   : > { %1154 = vmatpush3.msra.mxu1 %v1369_v1  ;;  %1155 = vmatprep.mubr.msk.f32.mxu1 %vm1300_vm0, %v1299_v0 }
  0x16   : > { %426 = vadd.xlane.f32.xlu0 %v425_v4  ;;  %1214 = vmatprep.subr.bf16.mxu1 %v1301_v10 }
  0x17   : > { %1208 = vmatprep.subr.bf16.mxu0 %v1301_v10 }
  0x18   : > { %1156 = vmatmul.mubr.msk.f32.vlgmr.msra.gmra.mrb[2].mxu1 %vm351_vm1, %v348_v5  ;;  %1210 = vmatpush3.bf16.msra.mxu0 %v1209_v22 }
  0x19   : > { %1193 = vmatprep.mubr.msk.f32.mxu1 %vm1300_vm0, %v1299_v0  ;;  %1211 = vmatprep.subr.bf16.mxu0 %v1301_v10 }
  0x1a   : > { %508 = vadd.xlane.f32.xlu0 %v507_v6  ;;  %1216 = vmatpush3.bf16.msra.mxu1 %v1215_v47 }
  0x1b   : > { %1217 = vmatprep.subr.bf16.mxu1 %v1301_v10  ;;  %v753_v10 = vsub.s32 0, %v707_v54 }
  0x1c   : > { %1213 = vmatpush3.bf16.msra.mxu0 %v1212_v31 }
  0x1e   : > { %1219 = vmatpush3.bf16.msra.mxu1 %v1218_v49 }
  0xa3   : > { %v427_v23 = vpop.xlane.xlu0 %426 }
  0xa4   : > { %vm428_vm3 = vcmp.eq.f32.partialorder %v427_v23, 0.0 }
  0xa5   : > { %v1109_v25 = vsel %vm428_vm3, 1.0, %v1299_v0 }
  0xa6   : > { %v431_v26 = vadd.f32 %v1109_v25, %v427_v23 }
  0xa7   : > { %v509_v24 = vpop.xlane.xlu0 %508 }
  0xa8   : > { %vm510_vm4 = vcmp.eq.f32.partialorder %v509_v24, 0.0  ;;  %1237 = vrcp.f32 %v431_v26 }
  0xa9   : > { %v1111_v27 = vsel %vm510_vm4, 1.0, %v1299_v0  ;;  %v705_v0 = vunpack.c.0.s8 %v704_v63 }
  0xaa   : > { %v513_v30 = vadd.f32 %v1111_v27, %v509_v24 }
  0xab   : > { %v708_v2 = vsub.s32 %v705_v0, %v707_v54 }
  0xac   : > { %1239 = vrcp.f32 %v513_v30 }
  0xb2   : > { %v1238_v32 = vpop.eup %1237 }
  0xb6   : > { %v1240_v36 = vpop.eup %1239 }
  0xe7   : > { %v421_v33 = vpop.f32.mrb[0].mxu1 }
  0xe8   : > { %v433_v34 = vmul.f32 %v1238_v32, %v421_v33  ;;  %v1152_v35 = vpop.f32.mrb[1].mxu1 }
  0xea   : > { %517 = vrot.lane.b32.xlu1 %v433_v34, %s1302_s21 }
  0xeb   : > { %v503_v37 = vpop.f32.mrb[2].mxu1 }
  0xec   : > { %v515_v38 = vmul.f32 %v1240_v36, %v503_v37  ;;  %v1157_v39 = vpop.f32.mrb[3].mxu1 }
  0xee   : > { %521 = vrot.lane.b32.xlu1 %v515_v38, %s1303_s22 }
  0xf2   : > { %816 = vrot.lane.b32.xlu1 %v1115_v56, %s1304_s13 }
 0x15c   : > { %v518_v40 = vpop.permute.xlu1 %517 }
 0x15d   : > { %v525_v41 = vsel %vm524_vm5, %v1369_v1, %v518_v40 }
 0x160   : > { %v522_v42 = vpop.permute.xlu1 %521 }
 0x161   : > { %v527_v43 = vsel %vm526_vm6, %v525_v41, %v522_v42 }
 0x162   : > { %1183 = vmatmul.mubr.msk.f32.vlgmr.msra.gmra.mrb[0].mxu0 %vm540_vm7, %v527_v43 }
 0x164   : > { %v817_v30 = vpop.permute.xlu1 %816 }
 0x235   : > { %v610_v50 = vpop.f32.mrb[0].mxu0 }
 0x236   : > { %1241 = vtanh.f32 %v610_v50  ;;  %v1184_v51 = vpop.f32.mrb[1].mxu0 }
 0x240   : > { %v1242_v52 = vpop.eup %1241 }
 0x241   : > { %1194 = vmatmul.mubr.msk.f32.vlgmr.msra.gmra.mrb[4].mxu1 %vm524_vm5, %v1242_v52 }
 0x314   : > { %v688_v59 = vpop.f32.mrb[4].mxu1 }
 0x315   : > { %v699_v60 = vadd.f32 %v1114_v58, %v688_v59  ;;  %791 = vrot.lane.b32.xlu0 %v688_v59, %s1305_s19  ;;  %v1195_v61 = vpop.f32.mrb[5].mxu1  ;;  %v702_v1 = vcombine.high %v688_v59, %v688_v59  ;;  %v709_v4 = vrot.slane %v688_v59, %v708_v2 }
 0x317   : > { %700 = vst.msk [vmem:[%s341_s18] sm:$0xff] %vm351_vm1, %v699_v60  ;;  %v716_v3 = vrot.slane %v702_v1, %v708_v2  ;;  %v717_v6 = vcombine.high %v709_v4, %v709_v4  ;;  %v725_v8 = vrot.slane %v709_v4, %v708_v2 }
 0x319   : > { %v718_v5 = vcombine.high %v716_v3, %v716_v3  ;;  %v739_v9 = vrot.slane %v717_v6, %v708_v2  ;;  %v747_v12 = vcombine.high %v725_v8, %v725_v8  ;;  %v754_v13 = vrot.slane %v725_v8, %v753_v10 }
 0x31a   : > { %v732_v25 = vrot.slane %v716_v3, %v708_v2 }
 0x31b   : > { %v746_v7 = vrot.slane %v718_v5, %v708_v2  ;;  %v758_v14 = vrot.slane %v739_v9, %v753_v10  ;;  %v749_v22 = vcombine.high %v739_v9, %v739_v9  ;;  %v762_v23 = vrot.slane %v747_v12, %v753_v10 }
 0x31c   : > { %v748_v28 = vcombine.high %v732_v25, %v732_v25  ;;  %v770_v29 = vrot.slane %v732_v25, %v753_v10 }
 0x31d   : > { %v750_v11 = vcombine.high %v746_v7, %v746_v7  ;;  %v774_v15 = vrot.slane %v746_v7, %v753_v10  ;;  %v766_v26 = vrot.slane %v749_v22, %v753_v10 }
 0x31e   : > { %v778_v36 = vrot.slane %v748_v28, %v753_v10 }
 0x31f   : > { %v782_v16 = vrot.slane %v750_v11, %v753_v10 }
 0x387   : > { %v792_v17 = vpop.permute.xlu0 %791 }
 0x388   : > { %v794_v18 = vadd.f32 %v792_v17, %v754_v13  ;;  %v799_v19 = vadd.f32 %v792_v17, %v774_v15  ;;  %v795_v20 = vadd.f32 %v792_v17, %v758_v14  ;;  %v801_v21 = vadd.f32 %v792_v17, %v782_v16 }
 0x389   : > { %v796_v24 = vadd.f32 %v792_v17, %v762_v23  ;;  %v797_v27 = vadd.f32 %v792_v17, %v766_v26  ;;  %v798_v32 = vadd.f32 %v792_v17, %v770_v29  ;;  %v800_v39 = vadd.f32 %v792_v17, %v778_v36 }
 0x38a   : > { %1243 = vtanh.f32 %v794_v18 }
 0x38b   : > { %1245 = vtanh.f32 %v799_v19 }
 0x38c   : > { %1247 = vtanh.f32 %v795_v20 }
 0x38d   : > { %1249 = vtanh.f32 %v801_v21 }
 0x38e   : > { %1251 = vtanh.f32 %v796_v24 }
 0x38f   : > { %1253 = vtanh.f32 %v797_v27 }
 0x390   : > { %1255 = vtanh.f32 %v798_v32 }
 0x391   : > { %1257 = vtanh.f32 %v800_v39 }
 0x394   : > { %v1244_v31 = vpop.eup %1243 }
 0x395   : > { %v1246_v33 = vpop.eup %1245  ;;  %v819_v34 = vmul.f32 %v1244_v31, %v817_v30 }
 0x396   : > { %v1248_v35 = vpop.eup %1247  ;;  %v824_v37 = vmul.f32 %v1246_v33, %v817_v30 }
 0x397   : > { %v1250_v38 = vpop.eup %1249  ;;  %835 = vrot.lane.b32.xlu1 %v819_v34, %s1307_s20  ;;  %v820_v40 = vmul.f32 %v1248_v35, %v817_v30 }
 0x398   : > { %845 = vrot.lane.b32.xlu0 %v824_v37, %s1307_s20  ;;  %v1252_v41 = vpop.eup %1251  ;;  %v826_v42 = vmul.f32 %v1250_v38, %v817_v30 }
 0x399   : > { %v821_v43 = vmul.f32 %v1252_v41, %v817_v30  ;;  %v1254_v44 = vpop.eup %1253 }
 0x39a   : > { %v822_v45 = vmul.f32 %v1254_v44, %v817_v30  ;;  %v1256_v46 = vpop.eup %1255 }
 0x39b   : > { %837 = vrot.lane.b32.xlu1 %v820_v40, %s1307_s20  ;;  %v823_v47 = vmul.f32 %v1256_v46, %v817_v30  ;;  %v1258_v48 = vpop.eup %1257 }
 0x39c   : > { %849 = vrot.lane.b32.xlu0 %v826_v42, %s1307_s20  ;;  %v825_v49 = vmul.f32 %v1258_v48, %v817_v30 }
 0x39f   : > { %839 = vrot.lane.b32.xlu1 %v821_v43, %s1307_s20 }
 0x3a3   : > { %841 = vrot.lane.b32.xlu1 %v822_v45, %s1307_s20 }
 0x3a7   : > { %843 = vrot.lane.b32.xlu1 %v823_v47, %s1307_s20 }
 0x3ab   : > { %847 = vrot.lane.b32.xlu1 %v825_v49, %s1307_s20 }
 0x409   : > { %v836_v50 = vpop.permute.xlu1 %835 }
 0x40a   : > { %v860_v51 = vsel %vm859_vm8, %v836_v50, 0.0  ;;  %v846_v56 = vpop.permute.xlu0 %845 }
 0x40b   : > { %861 = vadd.xlane.f32.xlu1 %v860_v51  ;;  %v875_v61 = vsel %vm859_vm8, %v846_v56, 0.0 }
 0x40d   : > { %v838_v52 = vpop.permute.xlu1 %837 }
 0x40e   : > { %v863_v53 = vsel %vm859_vm8, %v838_v52, 0.0  ;;  %v850_v63 = vpop.permute.xlu0 %849 }
 0x40f   : > { %864 = vadd.xlane.f32.xlu0 %v863_v53  ;;  %v881_v2 = vsel %vm859_vm8, %v850_v63, 0.0 }
 0x411   : > { %v840_v54 = vpop.permute.xlu1 %839 }
 0x412   : > { %v866_v55 = vsel %vm859_vm8, %v840_v54, 0.0 }
 0x413   : > { %867 = vadd.xlane.f32.xlu0 %v866_v55 }
 0x415   : > { %v842_v58 = vpop.permute.xlu1 %841 }
 0x416   : > { %v869_v59 = vsel %vm859_vm8, %v842_v58, 0.0 }
 0x417   : > { %870 = vadd.xlane.f32.xlu1 %v869_v59 }
 0x419   : > { %v844_v60 = vpop.permute.xlu1 %843 }
 0x41a   : > { %v872_v62 = vsel %vm859_vm8, %v844_v60, 0.0 }
 0x41b   : > { %876 = vadd.xlane.f32.xlu1 %v875_v61  ;;  %873 = vadd.xlane.f32.xlu0 %v872_v62 }
 0x41d   : > { %v848_v0 = vpop.permute.xlu1 %847 }
 0x41e   : > { %v878_v1 = vsel %vm859_vm8, %v848_v0, 0.0 }
 0x41f   : > { %879 = vadd.xlane.f32.xlu0 %v878_v1  ;;  %882 = vadd.xlane.f32.xlu1 %v881_v2 }
 0x498   : > { %v862_v3 = vpop.xlane.xlu1 %861 }
 0x499   : > { %v1116_v5 = vmul.f32 -1.442695, %v862_v3 }
 0x49b   : > { %1259 = vpow2.f32 %v1116_v5 }
 0x49c   : > { %v865_v4 = vpop.xlane.xlu0 %864 }
 0x49d   : > { %v1117_v6 = vmul.f32 -1.442695, %v865_v4 }
 0x49f   : > { %1261 = vpow2.f32 %v1117_v6 }
 0x4a0   : > { %v868_v7 = vpop.xlane.xlu0 %867 }
 0x4a1   : > { %v1118_v8 = vmul.f32 -1.442695, %v868_v7 }
 0x4a3   : > { %1263 = vpow2.f32 %v1118_v8 }
 0x4a4   : > { %v871_v9 = vpop.xlane.xlu1 %870 }
 0x4a5   : > { %v1119_v10 = vmul.f32 -1.442695, %v871_v9  ;;  %v1260_v15 = vpop.eup %1259 }
 0x4a6   : > { %v908_v22 = vadd.f32 1.0, %v1260_v15 }
 0x4a7   : > { %1265 = vpow2.f32 %v1119_v10 }
 0x4a8   : > { %v877_v11 = vpop.xlane.xlu1 %876  ;;  %v874_v12 = vpop.xlane.xlu0 %873 }
 0x4a9   : > { %v1121_v13 = vmul.f32 -1.442695, %v877_v11  ;;  %v1120_v14 = vmul.f32 -1.442695, %v874_v12  ;;  %v1262_v16 = vpop.eup %1261 }
 0x4aa   : > { %v909_v23 = vadd.f32 1.0, %v1262_v16 }
 0x4ab   : > { %1267 = vpow2.f32 %v1121_v13 }
 0x4ac   : > { %v883_v17 = vpop.xlane.xlu1 %882  ;;  %v880_v18 = vpop.xlane.xlu0 %879  ;;  %1269 = vpow2.f32 %v1120_v14 }
 0x4ad   : > { %v1264_v19 = vpop.eup %1263  ;;  %v1123_v20 = vmul.f32 -1.442695, %v883_v17  ;;  %v1122_v21 = vmul.f32 -1.442695, %v880_v18 }
 0x4ae   : > { %v910_v24 = vadd.f32 1.0, %v1264_v19 }
 0x4af   : > { %1271 = vpow2.f32 %v1123_v20 }
 0x4b0   : > { %1273 = vpow2.f32 %v1122_v21 }
 0x4b1   : > { %v1266_v25 = vpop.eup %1265  ;;  %1275 = vrcp.f32 %v908_v22 }
 0x4b2   : > { %v911_v26 = vadd.f32 1.0, %v1266_v25  ;;  %1277 = vrcp.f32 %v909_v23 }
 0x4b3   : > { %1279 = vrcp.f32 %v910_v24 }
 0x4b4   : > { %1281 = vrcp.f32 %v911_v26 }
 0x4b5   : > { %v1268_v27 = vpop.eup %1267 }
 0x4b6   : > { %v913_v28 = vadd.f32 1.0, %v1268_v27  ;;  %v1270_v29 = vpop.eup %1269 }
 0x4b7   : > { %v912_v30 = vadd.f32 1.0, %v1270_v29 }
 0x4b8   : > { %1283 = vrcp.f32 %v913_v28 }
 0x4b9   : > { %v1272_v31 = vpop.eup %1271  ;;  %1285 = vrcp.f32 %v912_v30 }
 0x4ba   : > { %v915_v32 = vadd.f32 1.0, %v1272_v31  ;;  %v1274_v33 = vpop.eup %1273 }
 0x4bb   : > { %v1276_v34 = vpop.eup %1275  ;;  %v914_v35 = vadd.f32 1.0, %v1274_v33 }
 0x4bc   : > { %1287 = vrcp.f32 %v915_v32  ;;  %v1278_v36 = vpop.eup %1277  ;;  %v945_v41 = vrot.slane %v1276_v34, %v1449_v57 }
 0x4bd   : > { %v1280_v37 = vpop.eup %1279  ;;  %1289 = vrcp.f32 %v914_v35  ;;  %v949_v39 = vrot.slane %v1278_v36, %v1449_v57 }
 0x4be   : > { %v1282_v38 = vpop.eup %1281  ;;  %v953_v40 = vrot.slane %v1280_v37, %v1449_v57 }
 0x4bf   : > { %v957_v42 = vrot.slane %v1282_v38, %v1449_v57  ;;  %v975_v45 = vsel %vm974_vm9, %v949_v39, %v945_v41 }
 0x4c0   : > { %v977_v46 = vsel %vm976_vm10, %v953_v40, %v975_v45 }
 0x4c1   : > { %v979_v49 = vsel %vm978_vm11, %v957_v42, %v977_v46 }
 0x4c2   : > { %v1284_v43 = vpop.eup %1283 }
 0x4c3   : > { %v1286_v44 = vpop.eup %1285  ;;  %v965_v50 = vrot.slane %v1284_v43, %v1449_v57 }
 0x4c4   : > { %v961_v47 = vrot.slane %v1286_v44, %v1449_v57 }
 0x4c6   : > { %v1288_v48 = vpop.eup %1287  ;;  %v981_v51 = vsel %vm980_vm12, %v961_v47, %v979_v49 }
 0x4c7   : > { %v1290_v52 = vpop.eup %1289  ;;  %v973_v53 = vrot.slane %v1288_v48, %v1449_v57  ;;  %v983_v55 = vsel %vm982_vm13, %v965_v50, %v981_v51 }
 0x4c8   : > { %v969_v54 = vrot.slane %v1290_v52, %v1449_v57 }
 0x4ca   : > { %v985_v56 = vsel %vm984_vm14, %v969_v54, %v983_v55 }
 0x4cb   : > { %v987_v58 = vsel %vm986_vm15, %v973_v53, %v985_v56 }
 0x4cc   : > { %989 = vst.msk [vmem:[%s345_s23] sm:$0xff] %vm351_vm1, %v987_v58 }
 0x4cd PF: > { %s19_s27 = sadd.s32 1, %s1297_s27  }
 0x4ce   : > { %p16_p4 = scmp.ge.s32.totalorder %s19_s27, 4  }
 0x4d0   :  { %18 = sbr.rel (!%p16_p4) target bundleno = 1 (0x1), region = 96 }

</bundles_post_ra>
